<compile_context>
chip_gen: v7x
topology: tpu7x:2x2x1
jax: 0.10.0
libtpu: 0.0.40
codegen_flags: <defaults>
</compile_context>

<pallas_src>
import functools

import jax
import jax.numpy as jnp
from jax.experimental import pallas as pl
from jax.experimental.pallas import tpu as pltpu


def _round_up(x, m):
    return (x + m - 1) // m * m


def _vmem_capacity_bytes():
    try:
        info = pltpu.get_tpu_info()
        for attr in ("vmem_capacity_bytes", "vmem_size_bytes", "vmem_bytes"):
            v = getattr(info, attr, None)
            if v:
                return int(v)
    except Exception:
        pass
    return 64 << 20  # conservative default: v7x per-TensorCore VMEM


# -----------------------------------------------------------------------------
# kernels
# -----------------------------------------------------------------------------
def _path_update_kernel(hx_ref, a_ref, bm_ref, w_ref, o_ref, *, lp):
    """One grid step = one batch element x one TI-tile of the `i` axis.

    hx_ref : (1, TI, CJ, lp)   hx, lane-packed (lp = G*PH, j = G*k + a)
    a_ref  : (1, CJ, 4*lp) f32 per-j constants  [Ar | Az | bu | Ac]
    bm_ref : (1, TI, 3*lp) f32 per-i constants  [Br | Bz | Bc]
    w_ref  : (lp, 3*lp)   bf16 block-diag h-side weights [Wr | Wz | Wu]
    o_ref  : (1, TI, CJ, lp)
    """
    hx3 = hx_ref[0]                                   # (TI, CJ, lp)
    ti, cj, _ = hx3.shape
    a = a_ref[0]                                      # (CJ, 4lp)
    bm = bm_ref[0]                                    # (TI, 3lp)
    w = w_ref[...]                                    # (lp, 3lp)

    # Single wide MXU matmul: K = lp (=128) fully fills the systolic depth,
    # output is lane-dense.  The reshape is a whole-tile relabel when CJ%8==0.
    gh = jnp.dot(hx3.astype(w.dtype).reshape(ti * cj, lp), w,
                 preferred_element_type=jnp.float32).reshape(ti, cj, 3 * lp)

    ar = a[None, :, 0 * lp:1 * lp]
    az = a[None, :, 1 * lp:2 * lp]
    bu = a[None, :, 2 * lp:3 * lp]
    ac = a[None, :, 3 * lp:4 * lp]
    br = bm[:, None, 0 * lp:1 * lp]
    bz = bm[:, None, 1 * lp:2 * lp]
    bc = bm[:, None, 2 * lp:3 * lp]

    # Gate math in f32, one lane-dense 128-slab at a time (no (TI,N,3PH) blob).
    r = jax.nn.sigmoid(gh[..., 0 * lp:1 * lp] + ar + br)
    z = jax.nn.sigmoid(gh[..., 1 * lp:2 * lp] + az + bz)
    u = jnp.tanh(ac + bc + r * (gh[..., 2 * lp:3 * lp] + bu))
    hxf = hx3.astype(jnp.float32)
    o_ref[0] = (z * hxf + (1.0 - z) * u).astype(o_ref.dtype)


def _path_update_nohx_kernel(a_ref, bm_ref, o_ref, *, lp):
    """Specialized hx=None path: hx==0 so gh==0 and new_h=(1-z)*u.  No big
    HBM input is streamed and no matmul runs -- output write only."""
    a = a_ref[0]                                      # (CJ, 4lp)
    bm = bm_ref[0]                                    # (TI, 3lp)
    ar = a[None, :, 0 * lp:1 * lp]
    az = a[None, :, 1 * lp:2 * lp]
    bu = a[None, :, 2 * lp:3 * lp]
    ac = a[None, :, 3 * lp:4 * lp]
    br = bm[:, None, 0 * lp:1 * lp]
    bz = bm[:, None, 1 * lp:2 * lp]
    bc = bm[:, None, 2 * lp:3 * lp]
    r = jax.nn.sigmoid(ar + br)
    z = jax.nn.sigmoid(az + bz)
    u = jnp.tanh(ac + bc + r * bu)
    o_ref[0] = ((1.0 - z) * u).astype(o_ref.dtype)


# -----------------------------------------------------------------------------
# wrapper
# -----------------------------------------------------------------------------
def path_update(nodes, bias, hx, params, *, block_i=None,
                compute_dtype=jnp.bfloat16, out_dtype=None,
                vmem_budget_bytes=None):
    """Pallas implementation of PathUpdateModel.forward (mask=None path).

    nodes : (B, N, H)    bias : (B, N, N, PH) (only shape-relevant in torch)
    hx    : (B, N, N, PH) or None.  Pass bf16 hx / out_dtype=bf16 to halve the
            dominant HBM traffic (gate math stays f32 inside the kernel).
    params: PyTorch nn.Linear layout {r_w,r_b,z_w,z_b,c_w,c_b,u_w,u_b}.
    """
    # TODO(synk): the `mask is not None` branch of the PyTorch forward is a
    # data-dependent ragged gather (nodes[mask]); not expressible with static
    # Pallas block shapes, so only the mask=None path is implemented.
    del bias  # numerically unused on the mask=None path (only zeros_like(bias))
    B, N, H = nodes.shape
    PH = params["u_w"].shape[0]
    if out_dtype is None:
        out_dtype = jnp.float32

    nodes = nodes.astype(jnp.float32)
    r_w, z_w, c_w, u_w = params["r_w"], params["z_w"], params["c_w"], params["u_w"]
    r_b, z_b, c_b, u_b = params["r_b"], params["z_b"], params["c_b"], params["u_b"]

    # ---- lane packing: G neighbouring j-columns share one 128-lane group -----
    G = 128 // PH if (PH <= 128 and 128 % PH == 0) else 1
    lp = G * PH
    NJp = _round_up(N, G)           # j axis padded to a multiple of G
    CJ = NJp // G

    # ---- x-side matmuls hoisted out of the kernel (only B*N rows) ------------
    Ar = nodes @ r_w[:, :H].T + r_b            # per-j, r gate   (B,N,PH)
    Az = nodes @ z_w[:, :H].T + z_b
    Ac = nodes @ c_w[:, :H].T + c_b
    Br = nodes @ r_w[:, H:2 * H].T             # per-i           (B,N,PH)
    Bz = nodes @ z_w[:, H:2 * H].T
    Bc = nodes @ c_w[:, H:2 * H].T

    def pad_j(x):
        return x if NJp == N else jnp.pad(x, ((0, 0), (0, NJp - N), (0, 0)))

    bu_slab = jnp.tile(u_b.astype(jnp.float32), G)[None, None, :]       # (1,1,lp)
    A = jnp.concatenate([pad_j(Ar).reshape(B, CJ, lp),
                         pad_j(Az).reshape(B, CJ, lp),
                         jnp.broadcast_to(bu_slab, (B, CJ, lp)),
                         pad_j(Ac).reshape(B, CJ, lp)], axis=-1)        # (B,CJ,4lp)

    # ---- VMEM-budgeted i-tile -------------------------------------------------
    hx_item = 0 if hx is None else jnp.dtype(hx.dtype).itemsize
    out_item = jnp.dtype(out_dtype).itemsize
    vmem_cap = _vmem_capacity_bytes()
    n8 = _round_up(N, 8)
    if block_i is not None:
        TI = min(_round_up(block_i, 8), n8)
    else:
        budget = vmem_budget_bytes
        if budget is None:
            budget = int(vmem_cap * 0.45)   # leave room for double-buffers + temps
        # per-i-row bytes: 2x(in)+2x(out) double buffers + ~8 f32 intermediate slabs
        per_row = NJp * PH * (2 * hx_item + 2 * out_item + 32) + 6 * lp * 4 * 2
        TI = max(8, min(n8, (budget // max(per_row, 1)) // 8 * 8))
        # give both v7x TensorCores work even for batch-1 calls
        if B * pl.cdiv(n8, TI) < 2 and n8 >= 16:
            TI = min(TI, _round_up(n8 // 2, 8))
    NIp = _round_up(N, TI)

    def pad_i(x):
        return x if NIp == N else jnp.pad(x, ((0, 0), (0, NIp - N), (0, 0)))

    Bm = jnp.concatenate([jnp.tile(pad_i(Br), (1, 1, G)),
                          jnp.tile(pad_i(Bz), (1, 1, G)),
                          jnp.tile(pad_i(Bc), (1, 1, G))], axis=-1)     # (B,NIp,3lp)

    # ---- pallas call ----------------------------------------------------------
    grid = (B, NIp // TI)
    cparams = pltpu.CompilerParams(
        dimension_semantics=("parallel", "parallel"),
        vmem_limit_bytes=min(int(vmem_cap * 0.92), 120 << 20))
    out_struct = jax.ShapeDtypeStruct((B, NIp, CJ, lp), out_dtype)
    o_spec = pl.BlockSpec((1, TI, CJ, lp), lambda b, it: (b, it, 0, 0))

    if hx is None:
        out = pl.pallas_call(
            functools.partial(_path_update_nohx_kernel, lp=lp),
            grid=grid,
            in_specs=[pl.BlockSpec((1, CJ, 4 * lp), lambda b, it: (b, 0, 0)),
                      pl.BlockSpec((1, TI, 3 * lp), lambda b, it: (b, it, 0))],
            out_specs=o_spec, out_shape=out_struct,
            compiler_params=cparams,
        )(A, Bm)
    else:
        # block-diagonal h-side weight: kron(I_G, Wh) per gate -> K=lp matmul
        eyeG = jnp.eye(G, dtype=jnp.float32)
        Wblk = jnp.concatenate([jnp.kron(eyeG, r_w[:, 2 * H:].T),
                                jnp.kron(eyeG, z_w[:, 2 * H:].T),
                                jnp.kron(eyeG, u_w.T)],
                               axis=1).astype(compute_dtype)            # (lp,3lp)
        hx_p = hx
        if NIp != N or NJp != N:
            hx_p = jnp.pad(hx, ((0, 0), (0, NIp - N), (0, NJp - N), (0, 0)))
        hx_w = hx_p.reshape(B, NIp, CJ, lp)        # free reshape: lane-dense wire
        out = pl.pallas_call(
            functools.partial(_path_update_kernel, lp=lp),
            grid=grid,
            in_specs=[pl.BlockSpec((1, TI, CJ, lp), lambda b, it: (b, it, 0, 0)),
                      pl.BlockSpec((1, CJ, 4 * lp), lambda b, it: (b, 0, 0)),
                      pl.BlockSpec((1, TI, 3 * lp), lambda b, it: (b, it, 0)),
                      pl.BlockSpec((lp, 3 * lp), lambda b, it: (0, 0))],
            out_specs=o_spec, out_shape=out_struct,
            compiler_params=cparams,
        )(hx_w, A, Bm, Wblk)

    out = out.reshape(B, NIp, NJp, PH)
    if NIp != N or NJp != N:
        out = out[:, :N, :N, :]
    return out


# -----------------------------------------------------------------------------
# pure-JAX reference (mirrors the PyTorch forward exactly)
# -----------------------------------------------------------------------------
def path_update_ref(nodes, bias, hx, params):
    B, N, H = nodes.shape
    x1 = jnp.broadcast_to(nodes[:, None, :, :], (B, N, N, H))      # [b,i,j] = nodes[b,j]
    x = jnp.concatenate([x1, jnp.swapaxes(x1, 1, 2)], axis=-1)     # (B,N,N,2H)
    if hx is None:
        hx = jnp.zeros_like(bias)
    rz = jnp.concatenate([x, hx], axis=-1)
    r = jax.nn.sigmoid(rz @ params["r_w"].T + params["r_b"])
    z = jax.nn.sigmoid(rz @ params["z_w"].T + params["z_b"])
    u = jnp.tanh(x @ params["c_w"].T + params["c_b"]
                 + r * (hx @ params["u_w"].T + params["u_b"]))
    return z * hx + (1.0 - z) * u


# -----------------------------------------------------------------------------
# main
# -----------------------------------------------------------------------------
if __name__ == "__main__":
    H = 32          # args.hidden_size
    PH = 16         # args.path_hidden_size
    B, N = 2, 5     # batch, node_num

    key = jax.random.PRNGKey(0)
    ks = jax.random.split(key, 12)

    def nrm(k, shape, std=0.1):
        return jax.random.normal(k, shape, jnp.float32) * std

    # PyTorch nn.Linear layout: weight (out_features, in_features), bias (out_features,)
    params = {
        "r_w": nrm(ks[0], (PH, 2 * H + PH)), "r_b": nrm(ks[1], (PH,), 0.02),
        "z_w": nrm(ks[2], (PH, 2 * H + PH)), "z_b": nrm(ks[3], (PH,), 0.02),
        "c_w": nrm(ks[4], (PH, 2 * H)),      "c_b": nrm(ks[5], (PH,), 0.02),
        "u_w": nrm(ks[6], (PH, PH)),         "u_b": nrm(ks[7], (PH,), 0.02),
    }
    nodes = nrm(ks[8], (B, N, H), 0.5)
    bias = nrm(ks[9], (B, N, N, PH), 0.5)    # constant_path (shape-only in forward)
    hx = nrm(ks[10], (B, N, N, PH), 0.5)     # structure_path

    fwd = jax.jit(path_update)

    # small / unaligned case, hx provided
    out = fwd(nodes, bias, hx, params)
    jax.block_until_ready(out)
    ref = path_update_ref(nodes, bias, hx, params)
    assert out.shape == (B, N, N, PH)
    assert float(jnp.max(jnp.abs(out - ref))) < 5e-2

    # specialized hx=None path
    out0 = fwd(nodes, bias, None, params)
    jax.block_until_ready(out0)
    ref0 = path_update_ref(nodes, bias, None, params)
    assert float(jnp.max(jnp.abs(out0 - ref0))) < 5e-2

    # lane-aligned larger case (N % 64 == 0: fast reshape path, multi-tile grid)
    B2, N2 = 1, 64
    nodes2 = nrm(ks[11], (B2, N2, H), 0.5)
    hx2 = jax.random.normal(jax.random.PRNGKey(1), (B2, N2, N2, PH), jnp.float32) * 0.5
    bias2 = jnp.zeros((B2, N2, N2, PH), jnp.float32)
    out2 = fwd(nodes2, bias2, hx2, params)
    jax.block_until_ready(out2)
    ref2 = path_update_ref(nodes2, bias2, hx2, params)
    assert out2.shape == (B2, N2, N2, PH)
    assert float(jnp.max(jnp.abs(out2 - ref2))) < 5e-2

    # bf16 wire format for hx + bf16 output (halved HBM traffic)
    fwd_bf16 = jax.jit(functools.partial(path_update, out_dtype=jnp.bfloat16))
    out3 = fwd_bf16(nodes2, bias2, hx2.astype(jnp.bfloat16), params)
    jax.block_until_ready(out3)
    assert float(jnp.max(jnp.abs(out3.astype(jnp.float32) - ref2))) < 5e-2

    print("KERNEL_OK")
</pallas_src>

<mosaic_0001>
module attributes {stable_mosaic.version = 11 : i64} {
  func.func @_path_update_kernel(%arg0: i32, %arg1: i32, %arg2: memref<1x8x1x128xf32, #tpu.memory_space<vmem>>, %arg3: memref<1x1x512xf32, #tpu.memory_space<vmem>>, %arg4: memref<1x8x384xf32, #tpu.memory_space<vmem>>, %arg5: memref<128x384xbf16, #tpu.memory_space<vmem>>, %arg6: memref<1x8x1x128xf32, #tpu.memory_space<vmem>>) attributes {dimension_semantics = [#tpu.dimension_semantics<parallel>, #tpu.dimension_semantics<parallel>], iteration_bounds = array<i64: 2, 1>, scalar_prefetch = 0 : i64, scratch_operands = 0 : i64, tpu.core_type = #tpu.core_type<tc>, window_params = [{transform_indices = @transform_0, window_bounds = array<i64: 1, 8, 1, 128>}, {transform_indices = @transform_1, window_bounds = array<i64: 1, 1, 512>}, {transform_indices = @transform_2, window_bounds = array<i64: 1, 8, 384>}, {pipeline_mode = #tpu.pipeline_mode<synchronous>, transform_indices = @transform_3, window_bounds = array<i64: 128, 384>}, {transform_indices = @transform_4, window_bounds = array<i64: 1, 8, 1, 128>}]} {
    %c0 = arith.constant 0 : index
    %c0_0 = arith.constant 0 : index
    %c0_1 = arith.constant 0 : index
    %c0_2 = arith.constant 0 : index
    %0 = vector.load %arg2[%c0, %c0_0, %c0_1, %c0_2] : memref<1x8x1x128xf32, #tpu.memory_space<vmem>>, vector<1x8x1x128xf32>
    %1 = vector.shape_cast %0 : vector<1x8x1x128xf32> to vector<8x1x128xf32>
    %c0_3 = arith.constant 0 : index
    %c0_4 = arith.constant 0 : index
    %c0_5 = arith.constant 0 : index
    %2 = vector.load %arg3[%c0_3, %c0_4, %c0_5] : memref<1x1x512xf32, #tpu.memory_space<vmem>>, vector<1x1x512xf32>
    %3 = vector.shape_cast %2 : vector<1x1x512xf32> to vector<1x512xf32>
    %c0_6 = arith.constant 0 : index
    %c0_7 = arith.constant 0 : index
    %c0_8 = arith.constant 0 : index
    %4 = vector.load %arg4[%c0_6, %c0_7, %c0_8] : memref<1x8x384xf32, #tpu.memory_space<vmem>>, vector<1x8x384xf32>
    %5 = vector.shape_cast %4 : vector<1x8x384xf32> to vector<8x384xf32>
    %c0_9 = arith.constant 0 : index
    %c0_10 = arith.constant 0 : index
    %6 = vector.load %arg5[%c0_9, %c0_10] : memref<128x384xbf16, #tpu.memory_space<vmem>>, vector<128x384xbf16>
    %7 = arith.truncf %1 : vector<8x1x128xf32> to vector<8x1x128xbf16>
    %8 = vector.shape_cast %7 : vector<8x1x128xbf16> to vector<8x128xbf16>
    %cst = arith.constant dense<0.000000e+00> : vector<8x384xf32>
    %9 = tpu.matmul %8, %6, %cst {dimension_numbers = #tpu.dot_dimension_numbers<[1], [0], [0], [1], [0, 0, 1, 1], [], []>} : vector<8x128xbf16>, vector<128x384xbf16>, vector<8x384xf32> -> vector<8x384xf32>
    %10 = vector.shape_cast %9 : vector<8x384xf32> to vector<8x1x384xf32>
    %11 = vector.extract_strided_slice %3 {offsets = [0, 0], sizes = [1, 128], strides = [1, 1]} : vector<1x512xf32> to vector<1x128xf32>
    %12 = vector.shape_cast %11 : vector<1x128xf32> to vector<1x1x128xf32>
    %13 = vector.extract_strided_slice %3 {offsets = [0, 128], sizes = [1, 128], strides = [1, 1]} : vector<1x512xf32> to vector<1x128xf32>
    %14 = vector.shape_cast %13 : vector<1x128xf32> to vector<1x1x128xf32>
    %15 = vector.extract_strided_slice %3 {offsets = [0, 256], sizes = [1, 128], strides = [1, 1]} : vector<1x512xf32> to vector<1x128xf32>
    %16 = vector.shape_cast %15 : vector<1x128xf32> to vector<1x1x128xf32>
    %17 = vector.extract_strided_slice %3 {offsets = [0, 384], sizes = [1, 128], strides = [1, 1]} : vector<1x512xf32> to vector<1x128xf32>
    %18 = vector.shape_cast %17 : vector<1x128xf32> to vector<1x1x128xf32>
    %19 = vector.extract_strided_slice %5 {offsets = [0, 0], sizes = [8, 128], strides = [1, 1]} : vector<8x384xf32> to vector<8x128xf32>
    %20 = vector.shape_cast %19 : vector<8x128xf32> to vector<8x1x128xf32>
    %21 = vector.extract_strided_slice %5 {offsets = [0, 128], sizes = [8, 128], strides = [1, 1]} : vector<8x384xf32> to vector<8x128xf32>
    %22 = vector.shape_cast %21 : vector<8x128xf32> to vector<8x1x128xf32>
    %23 = vector.extract_strided_slice %5 {offsets = [0, 256], sizes = [8, 128], strides = [1, 1]} : vector<8x384xf32> to vector<8x128xf32>
    %24 = vector.shape_cast %23 : vector<8x128xf32> to vector<8x1x128xf32>
    %25 = vector.extract_strided_slice %10 {offsets = [0, 0, 0], sizes = [8, 1, 128], strides = [1, 1, 1]} : vector<8x1x384xf32> to vector<8x1x128xf32>
    %26 = vector.broadcast %12 : vector<1x1x128xf32> to vector<8x1x128xf32>
    %27 = arith.addf %25, %26 : vector<8x1x128xf32>
    %28 = arith.addf %27, %20 : vector<8x1x128xf32>
    %29 = arith.negf %28 : vector<8x1x128xf32>
    %30 = math.exp %29 : vector<8x1x128xf32>
    %cst_11 = arith.constant 1.000000e+00 : f32
    %31 = vector.broadcast %cst_11 : f32 to vector<8x1x128xf32>
    %32 = arith.addf %31, %30 : vector<8x1x128xf32>
    %33 = arith.divf %31, %32 : vector<8x1x128xf32>
    %34 = vector.extract_strided_slice %10 {offsets = [0, 0, 128], sizes = [8, 1, 128], strides = [1, 1, 1]} : vector<8x1x384xf32> to vector<8x1x128xf32>
    %35 = vector.broadcast %14 : vector<1x1x128xf32> to vector<8x1x128xf32>
    %36 = arith.addf %34, %35 : vector<8x1x128xf32>
    %37 = arith.addf %36, %22 : vector<8x1x128xf32>
    %38 = arith.negf %37 : vector<8x1x128xf32>
    %39 = math.exp %38 : vector<8x1x128xf32>
    %cst_12 = arith.constant 1.000000e+00 : f32
    %40 = vector.broadcast %cst_12 : f32 to vector<8x1x128xf32>
    %41 = arith.addf %40, %39 : vector<8x1x128xf32>
    %42 = arith.divf %40, %41 : vector<8x1x128xf32>
    %43 = vector.broadcast %18 : vector<1x1x128xf32> to vector<8x1x128xf32>
    %44 = arith.addf %43, %24 : vector<8x1x128xf32>
    %45 = vector.extract_strided_slice %10 {offsets = [0, 0, 256], sizes = [8, 1, 128], strides = [1, 1, 1]} : vector<8x1x384xf32> to vector<8x1x128xf32>
    %46 = vector.broadcast %16 : vector<1x1x128xf32> to vector<8x1x128xf32>
    %47 = arith.addf %45, %46 : vector<8x1x128xf32>
    %48 = arith.mulf %33, %47 : vector<8x1x128xf32>
    %49 = arith.addf %44, %48 : vector<8x1x128xf32>
    %50 = math.tanh %49 : vector<8x1x128xf32>
    %51 = arith.mulf %42, %1 : vector<8x1x128xf32>
    %cst_13 = arith.constant 1.000000e+00 : f32
    %52 = vector.broadcast %cst_13 : f32 to vector<8x1x128xf32>
    %53 = arith.subf %52, %42 : vector<8x1x128xf32>
    %54 = arith.mulf %53, %50 : vector<8x1x128xf32>
    %55 = arith.addf %51, %54 : vector<8x1x128xf32>
    %c0_14 = arith.constant 0 : index
    %c0_15 = arith.constant 0 : index
    %c0_16 = arith.constant 0 : index
    %c0_17 = arith.constant 0 : index
    %56 = vector.load %arg6[%c0_14, %c0_15, %c0_16, %c0_17] : memref<1x8x1x128xf32, #tpu.memory_space<vmem>>, vector<1x8x1x128xf32>
    %57 = vector.shape_cast %56 : vector<1x8x1x128xf32> to vector<8x1x128xf32>
    %58 = vector.shape_cast %55 : vector<8x1x128xf32> to vector<1x8x1x128xf32>
    tpu.vector_store %arg6[%c0_14, %c0_15, %c0_16, %c0_17], %58 {strides = array<i32>} : memref<1x8x1x128xf32, #tpu.memory_space<vmem>>, vector<1x8x1x128xf32>,
    return
  }
  func.func @transform_0(%arg0: i32, %arg1: i32) -> (i32, i32, i32, i32) {
    %c0_i32 = arith.constant 0 : i32
    %c0_i32_0 = arith.constant 0 : i32
    %c0_i32_1 = arith.constant 0 : i32
    return %arg0, %arg1, %c0_i32, %c0_i32_0 : i32, i32, i32, i32
  }
  func.func @transform_1(%arg0: i32, %arg1: i32) -> (i32, i32, i32) {
    %c0_i32 = arith.constant 0 : i32
    %c0_i32_0 = arith.constant 0 : i32
    %c0_i32_1 = arith.constant 0 : i32
    return %arg0, %c0_i32, %c0_i32_0 : i32, i32, i32
  }
  func.func @transform_2(%arg0: i32, %arg1: i32) -> (i32, i32, i32) {
    %c0_i32 = arith.constant 0 : i32
    %c0_i32_0 = arith.constant 0 : i32
    return %arg0, %arg1, %c0_i32 : i32, i32, i32
  }
  func.func @transform_3(%arg0: i32, %arg1: i32) -> (i32, i32) {
    %c0_i32 = arith.constant 0 : i32
    %c0_i32_0 = arith.constant 0 : i32
    %c0_i32_1 = arith.constant 0 : i32
    return %c0_i32, %c0_i32_0 : i32, i32
  }
  func.func @transform_4(%arg0: i32, %arg1: i32) -> (i32, i32, i32, i32) {
    %c0_i32 = arith.constant 0 : i32
    %c0_i32_0 = arith.constant 0 : i32
    %c0_i32_1 = arith.constant 0 : i32
    return %arg0, %arg1, %c0_i32, %c0_i32_0 : i32, i32, i32, i32
  }
}

</mosaic_0001>

<bundles_post_ra>
// kernel: tile.29
= control target key start
LH: loop header
LB: loop body
LE: loop exit
PB: predicated region body
PF: predicated region fallthrough
CT: control target
= control target key end

     0   :  { %vm4_vm0 = vcmask 1047556   ;;  %s209_s14 = smov 96   ;;  %s210_s19 = smov 112   ;;  %vm6_vm1 = vcmask 130048   ;;  %vm25_vm2 = vcmask 1048448   ;;  %vm46_vm3 = vcmask 917248   ;;  %s388_s0 = inlined_call_operand.vmem [shape: f32[2,8,8,16], index: 0, kind: input, shape index: {}]   ;;  %s389_s1 = inlined_call_operand.vmem [shape: f32[2,8,128], index: 1, kind: output, shape index: {}]  }
   0x1   :  { %v172_v0 = vld [vmem:[%s388_s0 + $0x6] ss:$8 sm:$0xf]   ;;  %v167_v3 = vld [vmem:[%s388_s0 + $0x7] ss:$8 sm:$0xf]  }
   0x2   :  { %v173_v1 = vld [vmem:[%s388_s0 + $0x6] ss:$8 sm:$0xf0]   ;;  %v168_v4 = vld [vmem:[%s388_s0 + $0x7] ss:$8 sm:$0xf0]  }
   0x3   :  { %v43_v2 = vsel %vm4_vm0, %v173_v1, %v172_v0  ;;  %v22_v5 = vsel %vm4_vm0, %v168_v4, %v167_v3  ;;  %v174_v6 = vld [vmem:[%s388_s0 + $0x46] ss:$8 sm:$0xf]   ;;  %v169_v9 = vld [vmem:[%s388_s0 + $0x47] ss:$8 sm:$0xf]  }
   0x4   :  { %44 = vrot.lane.b32.xlu1 %v43_v2, %s209_s14  ;;  %v175_v7 = vld [vmem:[%s388_s0 + $0x46] ss:$8 sm:$0xf0]   ;;  %23 = vrot.lane.b32.xlu0 %v22_v5, %s210_s19  ;;  %v170_v10 = vld [vmem:[%s388_s0 + $0x47] ss:$8 sm:$0xf0]  }
   0x5   :  { %v53_v8 = vsel %vm4_vm0, %v175_v7, %v174_v6  ;;  %v32_v11 = vsel %vm4_vm0, %v170_v10, %v169_v9  ;;  %v179_v12 = vld [vmem:[%s388_s0 + $0x45] ss:$8 sm:$0xf]   ;;  %v184_v18 = vld [vmem:[%s388_s0 + $0x44] ss:$8 sm:$0xf]  }
   0x6   :  { %v180_v13 = vld [vmem:[%s388_s0 + $0x45] ss:$8 sm:$0xf0]   ;;  %v185_v19 = vld [vmem:[%s388_s0 + $0x44] ss:$8 sm:$0xf0]  }
   0x7   :  { %v177_v14 = vld [vmem:[%s388_s0 + $0x5] ss:$8 sm:$0xf]   ;;  %v74_v16 = vsel %vm4_vm0, %v180_v13, %v179_v12  ;;  %v182_v20 = vld [vmem:[%s388_s0 + $0x4] ss:$8 sm:$0xf]   ;;  %v95_v22 = vsel %vm4_vm0, %v185_v19, %v184_v18 }
   0x8   :  { %54 = vrot.lane.b32.xlu1 %v53_v8, %s209_s14  ;;  %v178_v15 = vld [vmem:[%s388_s0 + $0x5] ss:$8 sm:$0xf0]   ;;  %33 = vrot.lane.b32.xlu0 %v32_v11, %s210_s19  ;;  %v183_v21 = vld [vmem:[%s388_s0 + $0x4] ss:$8 sm:$0xf0]  }
   0x9   :  { %v64_v17 = vsel %vm4_vm0, %v178_v15, %v177_v14  ;;  %s211_s11 = smov 80   ;;  %v85_v23 = vsel %vm4_vm0, %v183_v21, %v182_v20  ;;  %v189_v24 = vld [vmem:[%s388_s0 + $0x43] ss:$8 sm:$0xf]   ;;  %s212_s20 = smov 64   ;;  %vm67_vm4 = vcmask 786048  }
   0xa   :  { %v190_v25 = vld [vmem:[%s388_s0 + $0x43] ss:$8 sm:$0xf0]   ;;  %v194_v28 = vld [vmem:[%s388_s0 + $0x42] ss:$8 sm:$0xf]  }
   0xb   :  { %v187_v26 = vld [vmem:[%s388_s0 + $0x3] ss:$8 sm:$0xf]   ;;  %v195_v29 = vld [vmem:[%s388_s0 + $0x42] ss:$8 sm:$0xf0]   ;;  %v116_v30 = vsel %vm4_vm0, %v190_v25, %v189_v24 }
   0xc   :  { %75 = vrot.lane.b32.xlu1 %v74_v16, %s211_s11  ;;  %65 = vrot.lane.b32.xlu0 %v64_v17, %s211_s11  ;;  %v188_v27 = vld [vmem:[%s388_s0 + $0x3] ss:$8 sm:$0xf0]   ;;  %v192_v31 = vld [vmem:[%s388_s0 + $0x2] ss:$8 sm:$0xf]   ;;  %v137_v40 = vsel %vm4_vm0, %v195_v29, %v194_v28 }
   0xd   :  { %v2_v32 = vld [vmem:[%s388_s0] ss:$8 sm:$0xf]   ;;  %v106_v33 = vsel %vm4_vm0, %v188_v27, %v187_v26  ;;  %v193_v36 = vld [vmem:[%s388_s0 + $0x2] ss:$8 sm:$0xf0]  }
   0xe   :  { %v3_v34 = vld [vmem:[%s388_s0] ss:$8 sm:$0xf0]   ;;  %s213_s8 = smov 48   ;;  %v127_v41 = vsel %vm4_vm0, %v193_v36, %v192_v31  ;;  %s215_s21 = smov 16   ;;  %vm88_vm5 = vcmask 654848  }
   0xf   :  { %v164_v35 = vld [vmem:[%s388_s0 + $0x40] ss:$8 sm:$0xf]   ;;  %v5_v37 = vsel %vm4_vm0, %v3_v34, %v2_v32  ;;  %v199_v42 = vld [vmem:[%s388_s0 + $0x41] ss:$8 sm:$0xf]  }
  0x10   :  { %96 = vrot.lane.b32.xlu1 %v95_v22, %s212_s20  ;;  %86 = vrot.lane.b32.xlu0 %v85_v23, %s212_s20  ;;  %v165_v38 = vld [vmem:[%s388_s0 + $0x40] ss:$8 sm:$0xf0]   ;;  %7 = vst.msk [vmem:[%s389_s1] sm:$0xff] %vm6_vm1, %v5_v37   ;;  %vm109_vm6 = vcmask 523648   ;;  %vm130_vm7 = vcmask 392448  }
  0x11   :  { %v13_v39 = vsel %vm4_vm0, %v165_v38, %v164_v35  ;;  %v200_v43 = vld [vmem:[%s388_s0 + $0x41] ss:$8 sm:$0xf0]   ;;  %vm151_vm8 = vcmask 261248  }
  0x12   :  { %166 = vst.msk [vmem:[%s389_s1 + $0x8] sm:$0xff] %vm6_vm1, %v13_v39   ;;  %v197_v44 = vld [vmem:[%s388_s0 + $0x1] ss:$8 sm:$0xf]   ;;  %v158_v46 = vsel %vm4_vm0, %v200_v43, %v199_v42 }
  0x13   :  { %v198_v45 = vld [vmem:[%s388_s0 + $0x1] ss:$8 sm:$0xf0]   ;;  %s214_s0 = smov 32  }
  0x14   :  { %117 = vrot.lane.b32.xlu1 %v116_v30, %s213_s8  ;;  %107 = vrot.lane.b32.xlu0 %v106_v33, %s213_s8  ;;  %v148_v47 = vsel %vm4_vm0, %v198_v45, %v197_v44 }
  0x18   :  { %138 = vrot.lane.b32.xlu1 %v137_v40, %s214_s0  ;;  %128 = vrot.lane.b32.xlu0 %v127_v41, %s214_s0 }
  0x1c   :  { %159 = vrot.lane.b32.xlu1 %v158_v46, %s215_s21  ;;  %149 = vrot.lane.b32.xlu0 %v148_v47, %s215_s21 }
  0x76   :  { %v45_v48 = vpop.permute.xlu1 %44   ;;  %v24_v49 = vpop.permute.xlu0 %23  }
  0x77   :  { %26 = vst.msk [vmem:[%s389_s1] sm:$0xff] %vm25_vm2, %v24_v49  }
  0x78   :  { %47 = vst.msk [vmem:[%s389_s1] sm:$0xff] %vm46_vm3, %v45_v48  }
  0x7a   :  { %v55_v50 = vpop.permute.xlu1 %54   ;;  %v34_v51 = vpop.permute.xlu0 %33  }
  0x7b   :  { %171 = vst.msk [vmem:[%s389_s1 + $0x8] sm:$0xff] %vm25_vm2, %v34_v51  }
  0x7c   :  { %176 = vst.msk [vmem:[%s389_s1 + $0x8] sm:$0xff] %vm46_vm3, %v55_v50  }
  0x7e   :  { %v76_v52 = vpop.permute.xlu1 %75   ;;  %v66_v53 = vpop.permute.xlu0 %65  }
  0x7f   :  { %181 = vst.msk [vmem:[%s389_s1 + $0x8] sm:$0xff] %vm67_vm4, %v76_v52   ;;  %68 = vst.msk [vmem:[%s389_s1] sm:$0xff] %vm67_vm4, %v66_v53  }
  0x82   :  { %v97_v54 = vpop.permute.xlu1 %96   ;;  %v87_v55 = vpop.permute.xlu0 %86  }
  0x83   :  { %186 = vst.msk [vmem:[%s389_s1 + $0x8] sm:$0xff] %vm88_vm5, %v97_v54   ;;  %89 = vst.msk [vmem:[%s389_s1] sm:$0xff] %vm88_vm5, %v87_v55  }
  0x86   :  { %v118_v56 = vpop.permute.xlu1 %117   ;;  %v108_v57 = vpop.permute.xlu0 %107  }
  0x87   :  { %191 = vst.msk [vmem:[%s389_s1 + $0x8] sm:$0xff] %vm109_vm6, %v118_v56   ;;  %110 = vst.msk [vmem:[%s389_s1] sm:$0xff] %vm109_vm6, %v108_v57  }
  0x8a   :  { %v139_v58 = vpop.permute.xlu1 %138   ;;  %v129_v59 = vpop.permute.xlu0 %128  }
  0x8b   :  { %196 = vst.msk [vmem:[%s389_s1 + $0x8] sm:$0xff] %vm130_vm7, %v139_v58   ;;  %131 = vst.msk [vmem:[%s389_s1] sm:$0xff] %vm130_vm7, %v129_v59  }
  0x8e   :  { %v160_v60 = vpop.permute.xlu1 %159   ;;  %v150_v61 = vpop.permute.xlu0 %149  }
  0x8f   :  { %201 = vst.msk [vmem:[%s389_s1 + $0x8] sm:$0xff] %vm151_vm8, %v160_v60   ;;  %152 = vst.msk [vmem:[%s389_s1] sm:$0xff] %vm151_vm8, %v150_v61  }

// kernel: tile.23
= control target key start
LH: loop header
LB: loop body
LE: loop exit
PB: predicated region body
PF: predicated region fallthrough
CT: control target
= control target key end

     0   :  { %s22_s0 = inlined_call_operand.vmem [shape: f32[16], index: 0, kind: input, shape index: {}]   ;;  %s23_s1 = inlined_call_operand.vmem [shape: f32[8,16], index: 1, kind: output, shape index: {}]  }
   0x1   :  { %v4_v0 = vld [vmem:[%s22_s0] ss:$0 sm:$0xff] }
   0x2   :  { %5 = vst [vmem:[%s23_s1] sm:$0xff] %v4_v0 }

// kernel: path_update.1
= control target key start
LH: loop header
LB: loop body
LE: loop exit
PB: predicated region body
PF: predicated region fallthrough
CT: control target
= control target key end

     0   :  { %s1471_s15 = smov 0   ;;  %s1473_s16 = smov 0   ;;  %s1808_s0 = inlined_call_operand.vmem [shape: f32[2,8,1,128], index: 0, kind: input, shape index: {}]   ;;  %s1809_s1 = inlined_call_operand.vmem [shape: f32[2,1,512], index: 1, kind: input, shape index: {}]   ;;  %s1810_s2 = inlined_call_operand.vmem [shape: f32[2,8,384], index: 2, kind: input, shape index: {}]   ;;  %s1811_s3 = inlined_call_operand.vmem [shape: bf16[128,384], index: 3, kind: input, shape index: {}]   ;;  %s1812_s4 = inlined_call_operand.vmem [shape: f32[2,8,1,128], index: 4, kind: output, shape index: {}]  }
   0x1   :  { %s1475_s17 = smov 0  }
   0x2 LB: > { %s26_s18 = sadd.s32 1, %s1436_s16  ;;  %p1198_p0 = scmp.ge.s32.totalorder %s1440_s17, 1  ;;  %s1440_s17 = sphi %s1475_s17, %s14_s17   ;;  %s1436_s16 = sphi %s1473_s16, %s1814_s16   ;;  %s1432_s15 = sphi %s1471_s15, %s1813_s15  }
   0x3   : > { %p28_p1 = scmp.ge.s32.totalorder %s26_s18, 2  ;;  %p207_p2 = scmp.lt.s32.totalorder %s1440_s17, 3 }
   0x5   : > { %s1816_s18 = smov (%p28_p1, %s26_s18), 0  ;;  %p208_p3 = pnand %p1198_p0, %p207_p2 }
   0x6   : > { %v1303_v0 = vld [vmem:[%s1811_s3 + $0x4] ss:$12 sps:$4 sm:$0xff] (!%p208_p3)   ;;  %v1442_v1 = vmov (!%p208_p3), 0.0   ;;  %v1305_v2 = vld [vmem:[%s1811_s3 + $0x8] ss:$12 sps:$4 sm:$0xff] (!%p208_p3)   ;;  %vm1443_vm0 = vmmov (!%p208_p3), 0  }
   0x7   : > { %211 = sbr.rel (%p208_p3) target bundleno = 325 (0x145), region = 36  ;;  %1254 = vmatprep.subr.bf16.mxu1 (!%p208_p3), %v1442_v1  ;;  %1270 = vmatprep.mubr.msk.bf16.mxu1 (!%p208_p3), %vm1443_vm0, %v1442_v1  ;;  %v1306_v3 = vld [vmem:[%s1811_s3] ss:$12 sps:$4 sm:$0xff] (!%p208_p3)   ;;  %v1307_v4 = vld [vmem:[%s1811_s3 + $0x1c] ss:$12 sps:$4 sm:$0xff] (!%p208_p3)   ;;  %v1444_v5 = vmov (!%p208_p3), 0  }
   0x8   : > { %503 = vmatprep.subr.bf16.mxu0 (!%p208_p3), %v1303_v0  ;;  %1255 = vmatpush3.bf16.msra.mxu1 (!%p208_p3), %v1305_v2  ;;  %v1309_v6 = vld [vmem:[%s1811_s3 + $0x20] ss:$12 sps:$4 sm:$0xff] (!%p208_p3)   ;;  %v1310_v7 = vld [vmem:[%s1811_s3 + $0x18] ss:$12 sps:$4 sm:$0xff] (!%p208_p3)   ;;  %p253_p4 = scmp.lt.s32.totalorder (!%p208_p3), %s1432_s15, 1  ;;  %vm353_vm1 = vcmask (!%p208_p3), 1041409  }
   0x9   : > { %535 = vmatprep.mubr.bf16.mxu0 (!%p208_p3), %v1444_v5  ;;  %504 = vmatpush1.bf16.msra.mxu0 (!%p208_p3), %v1306_v3  ;;  %v1311_v8 = vld [vmem:[%s1811_s3 + $0x34] ss:$12 sps:$4 sm:$0xff] (!%p208_p3)   ;;  %v1313_v9 = vld [vmem:[%s1811_s3 + $0x38] ss:$12 sps:$4 sm:$0xff] (!%p208_p3)   ;;  %v1314_v10 = vld [vmem:[%s1811_s3 + $0x30] ss:$12 sps:$4 sm:$0xff] (!%p208_p3)   ;;  %v593_v3 = vlaneseq (!%p208_p3) }
   0xa   : > { %1256 = vmatprep.subr.bf16.mxu1 (!%p208_p3), %v1442_v1  ;;  %505 = vmatprep.subr.bf16.mxu0 (!%p208_p3), %v1307_v4  ;;  %v1315_v11 = vld [vmem:[%s1811_s3 + $0x4c] ss:$12 sps:$4 sm:$0xff] (!%p208_p3)   ;;  %v1317_v12 = vld [vmem:[%s1811_s3 + $0x50] ss:$12 sps:$4 sm:$0xff] (!%p208_p3)   ;;  %v1318_v13 = vld [vmem:[%s1811_s3 + $0x48] ss:$12 sps:$4 sm:$0xff] (!%p208_p3)  }
   0xb   : > { %v1319_v14 = vld [vmem:[%s1811_s3 + $0x64] ss:$12 sps:$4 sm:$0xff] (!%p208_p3)   ;;  %v1321_v15 = vld [vmem:[%s1811_s3 + $0x68] ss:$12 sps:$4 sm:$0xff] (!%p208_p3)   ;;  %v1322_v16 = vld [vmem:[%s1811_s3 + $0x60] ss:$12 sps:$4 sm:$0xff] (!%p208_p3)  }
   0xc   : > { %1257 = vmatpush3.bf16.msra.mxu1 (!%p208_p3), %v1309_v6  ;;  %v1323_v17 = vld [vmem:[%s1811_s3 + $0x7c] ss:$12 sps:$4 sm:$0xff] (!%p208_p3)   ;;  %v1325_v18 = vld [vmem:[%s1811_s3 + $0x80] ss:$12 sps:$4 sm:$0xff] (!%p208_p3)   ;;  %v1326_v19 = vld [vmem:[%s1811_s3 + $0x78] ss:$12 sps:$4 sm:$0xff] (!%p208_p3)  }
   0xd   : > { %506 = vmatpush1.bf16.msra.mxu0 (!%p208_p3), %v1310_v7  ;;  %1258 = vmatprep.subr.bf16.mxu1 (!%p208_p3), %v1442_v1  ;;  %v1327_v31 = vld [vmem:[%s1811_s3 + $0x94] ss:$12 sps:$4 sm:$0xff] (!%p208_p3)   ;;  %v1329_v41 = vld [vmem:[%s1811_s3 + $0x98] ss:$12 sps:$4 sm:$0xff] (!%p208_p3)   ;;  %vm356_vm2 = vcmask (!%p208_p3), 1042434   ;;  %vm359_vm3 = vcmask (!%p208_p3), 1043459  }
   0xe   : > { %507 = vmatprep.subr.bf16.mxu0 %v1311_v8  ;;  %s1818_s15 = smov (!%p253_p4, %s1432_s15), 1  ;;  %v1330_v45 = vld [vmem:[%s1811_s3 + $0x90] ss:$12 sps:$4 sm:$0xff]   ;;  %v1331_v50 = vld [vmem:[%s1811_s3 + $0xac] ss:$12 sps:$4 sm:$0xff]   ;;  %vm362_vm4 = vcmask 1044484  }
   0xf   : > { %s1199_s23 = sshll.u32 %s1818_s15, 3  ;;  %v1333_v54 = vld [vmem:[%s1811_s3 + $0xb0] ss:$12 sps:$4 sm:$0xff]   ;;  %vm365_vm5 = vcmask 1045509   ;;  %v1334_v57 = vld [vmem:[%s1811_s3 + $0xa8] ss:$12 sps:$4 sm:$0xff]  }
  0x10   : > { %1259 = vmatpush3.bf16.msra.mxu1 %v1313_v9  ;;  %s259_s30 = scalar_lea.vmem %s1808_s0, %s1199_s23  ;;  %vm368_vm6 = vcmask 1046534   ;;  %vm371_vm7 = vcmask 1047559   ;;  %s1274_s28 = smul.u32 24, %s1818_s15  ;;  %v594_v6 = vshrl.u32 %v593_v3, 7 }
  0x11   : > { %508 = vmatpush1.bf16.msra.mxu0 %v1314_v10  ;;  %1260 = vmatprep.subr.bf16.mxu1 %v1442_v1  ;;  %v1561_v20 = vld [vmem:[%s259_s30] sm:$0x1]  ;;  %v1563_v21 = vld [vmem:[%s259_s30 + $0x1] sm:$0x1]  ;;  %v1565_v22 = vld [vmem:[%s259_s30 + $0x2] sm:$0x1]  ;;  %s1782_s12 = scalar_lea.vmem %s1812_s4, %s1199_s23 }
  0x12   : > { %509 = vmatprep.subr.bf16.mxu0 %v1315_v11  ;;  %v1567_v23 = vld [vmem:[%s259_s30 + $0x3] sm:$0x1]  ;;  %v328_v24 = vpack.c.bf16 %v1561_v20, %v1561_v20  ;;  %v1572_v25 = vld [vmem:[%s259_s30 + $0x4] sm:$0x1]  ;;  %v1574_v26 = vld [vmem:[%s259_s30 + $0x5] sm:$0x1]  ;;  %v329_v28 = vpack.c.bf16 %v1563_v21, %v1563_v21  ;;  %v330_v29 = vpack.c.bf16 %v1565_v22, %v1565_v22  ;;  %s273_s5 = scalar_lea.vmem %s1810_s2, %s1274_s28 }
  0x13   : > { %v1576_v27 = vld [vmem:[%s259_s30 + $0x6] sm:$0x1]  ;;  %v331_v30 = vpack.c.bf16 %v1567_v23, %v1567_v23  ;;  %v1587_v32 = vld [vmem:[%s259_s30 + $0x7] sm:$0x1]  ;;  %v332_v33 = vpack.c.bf16 %v1572_v25, %v1572_v25  ;;  %v333_v34 = vpack.c.bf16 %v1574_v26, %v1574_v26  ;;  %v294_v9 = vld [vmem:[%s273_s5 + $0x8] sm:$0xff]  ;;  %s1200_s6 = sshll.u32 %s1818_s15, 2 }
  0x14   : > { %1261 = vmatpush3.bf16.msra.mxu1 %v1317_v12  ;;  %v334_v35 = vpack.c.bf16 %v1576_v27, %v1576_v27  ;;  %v344_v36 = vunpack.c.l.b16 %v328_v24  ;;  %v335_v37 = vpack.c.bf16 %v1587_v32, %v1587_v32  ;;  %v345_v38 = vunpack.c.l.b16 %v329_v28  ;;  %v293_v4 = vld [vmem:[%s273_s5] sm:$0xff]  ;;  %v1625_v24 = vld [vmem:[%s273_s5 + $0x10] sm:$0xff]  ;;  %s264_s9 = scalar_lea.vmem %s1809_s1, %s1200_s6 }
  0x15   : > { %510 = vmatpush1.bf16.msra.mxu0 %v1318_v13  ;;  %1262 = vmatprep.subr.bf16.mxu1 %v1442_v1  ;;  %v346_v39 = vunpack.c.l.b16 %v330_v29  ;;  %v347_v40 = vunpack.c.l.b16 %v331_v30  ;;  %v348_v42 = vunpack.c.l.b16 %v332_v33  ;;  %v349_v43 = vunpack.c.l.b16 %v333_v34 }
  0x16   : > { %511 = vmatprep.subr.bf16.mxu0 %v1319_v14  ;;  %v350_v44 = vunpack.c.l.b16 %v334_v35  ;;  %v351_v46 = vunpack.c.l.b16 %v335_v37  ;;  %v352_v47 = vrot.slane %v345_v38, 7  ;;  %v663_v7 = vcombine.high %v293_v4, %v293_v4 }
  0x17   : > { %v355_v48 = vrot.slane %v346_v39, 6  ;;  %v358_v49 = vrot.slane %v347_v40, 5  ;;  %v361_v51 = vrot.slane %v348_v42, 4  ;;  %v364_v53 = vrot.slane %v349_v43, 3 }
  0x18   : > { %1263 = vmatpush3.bf16.msra.mxu1 %v1321_v15  ;;  %v354_v52 = vsel %vm353_vm1, %v352_v47, %v344_v36  ;;  %v367_v56 = vrot.slane %v350_v44, 2  ;;  %v370_v59 = vrot.slane %v351_v46, 1  ;;  %v721_v12 = vcombine.high %v294_v9, %v294_v9 }
  0x19   : > { %512 = vmatpush1.bf16.msra.mxu0 %v1322_v16  ;;  %1264 = vmatprep.subr.bf16.mxu1 %v1442_v1  ;;  %v357_v55 = vsel %vm356_vm2, %v355_v48, %v354_v52 }
  0x1a   : > { %513 = vmatprep.subr.bf16.mxu0 %v1323_v17  ;;  %v360_v58 = vsel %vm359_vm3, %v358_v49, %v357_v55 }
  0x1b   : > { %v363_v60 = vsel %vm362_vm4, %v361_v51, %v360_v58 }
  0x1c   : > { %1265 = vmatpush3.bf16.msra.mxu1 %v1325_v18  ;;  %v366_v61 = vsel %vm365_vm5, %v364_v53, %v363_v60 }
  0x1d   : > { %514 = vmatpush1.bf16.msra.mxu0 %v1326_v19  ;;  %1266 = vmatprep.subr.bf16.mxu1 %v1442_v1  ;;  %v369_v62 = vsel %vm368_vm6, %v367_v56, %v366_v61 }
  0x1e   : > { %515 = vmatprep.subr.bf16.mxu0 %v1327_v31  ;;  %v372_v63 = vsel %vm371_vm7, %v370_v59, %v369_v62 }
  0x1f   : > { %v373_v0 = vpack.c.b16 %v372_v63, %v372_v63 }
  0x20   : > { %1267 = vmatpush3.bf16.msra.mxu1 %v1329_v41 }
  0x21   : > { %516 = vmatpush1.bf16.msra.mxu0 %v1330_v45  ;;  %1268 = vmatprep.subr.bf16.mxu1 %v1442_v1  ;;  %v1445_v1 = vmov 1966171168   ;;  %v779_v45 = vcombine.high %v1625_v24, %v1625_v24 }
  0x22   : > { %517 = vmatprep.subr.bf16.mxu0 %v1331_v50  ;;  %v591_v2 = vunpack.c.l.s4 %v1445_v1 }
  0x24   : > { %1269 = vmatpush3.bf16.msra.mxu1 %v1333_v54  ;;  %v592_v5 = vunpack.c.0.s8 %v591_v2  ;;  %v1646_v54 = vld [vmem:[%s264_s9] sm:$0xf] }
  0x25   : > { %518 = vmatpush1.bf16.msra.mxu0 %v1334_v57 }
  0x26   : > { %v1620_v8 = vsub.s32 %v592_v5, %v594_v6 }
  0x27   : > { %1271 = vmatmul.mubr.bf16.vlgmr.msra.gmra.mrb[0].mxu1 %v373_v0 }
  0x28   : > { %536 = vmatmul.mubr.bf16.vlgmr.msra.gmra.mrb[0].mxu0 %v373_v0  ;;  %v670_v10 = vrot.slane %v293_v4, %v1620_v8  ;;  %v677_v11 = vrot.slane %v663_v7, %v1620_v8  ;;  %v728_v35 = vrot.slane %v294_v9, %v1620_v8  ;;  %v735_v36 = vrot.slane %v721_v12, %v1620_v8 }
  0x29   : > { %v1644_v53 = vrot.slane %v1625_v24, %v1620_v8 }
  0x2a   : > { %v678_v18 = vcombine.high %v670_v10, %v670_v10  ;;  %v679_v19 = vcombine.high %v677_v11, %v677_v11  ;;  %v686_v34 = vrot.slane %v670_v10, %v1620_v8  ;;  %v693_v42 = vrot.slane %v677_v11, %v1620_v8 }
  0x2b   : > { %v736_v51 = vcombine.high %v728_v35, %v728_v35  ;;  %v737_v52 = vcombine.high %v735_v36, %v735_v36  ;;  %v744_v62 = vrot.slane %v728_v35, %v1620_v8  ;;  %v1694_v12 = vrot.slane %v735_v36, %v1620_v8 }
  0x2c   : > { %v700_v43 = vrot.slane %v678_v18, %v1620_v8  ;;  %v707_v44 = vrot.slane %v679_v19, %v1620_v8  ;;  %v708_v50 = vcombine.high %v686_v34, %v686_v34  ;;  %v709_v59 = vcombine.high %v693_v42, %v693_v42 }
  0x2d   : > { %v1700_v24 = vrot.slane %v737_v52, %v1620_v8  ;;  %v901_v36 = vrot.slane %v1646_v54, 1 }
  0x2e   : > { %v710_v60 = vcombine.high %v700_v43, %v700_v43  ;;  %v711_v61 = vcombine.high %v707_v44, %v707_v44 }
  0xfa   : > { %v578_v13 = vpop.f32.mrb[0].mxu1 }
  0xfb   : > { %v537_v14 = vpop.f32.mrb[0].mxu0  ;;  %v589_v15 = vcombine.high %v578_v13, %v578_v13  ;;  %v1272_v16 = vpop.f32.mrb[1].mxu1  ;;  %v610_v39 = vrot.slane %v578_v13, %v1620_v8 }
  0xfc   : > { %v539_v17 = vpop.f32.mrb[1].mxu0  ;;  %v581_v30 = vpop.f32.mrb[2].mxu1  ;;  %v1697_v16 = vrot.slane %v736_v51, %v1620_v8 }
  0xfd   : > { %v587_v28 = vcombine.low %v537_v14, %v539_v17  ;;  %v588_v29 = vcombine.high %v537_v14, %v539_v17  ;;  %v541_v31 = vpop.f32.mrb[2].mxu0  ;;  %v617_v33 = vrot.slane %v589_v15, %v1620_v8  ;;  %v1273_v37 = vpop.f32.mrb[3].mxu1 }
  0xfe   : > { %v542_v38 = vpop.f32.mrb[3].mxu0 }
  0xff   : > { %v596_v40 = vrot.slane %v587_v28, %v1620_v8  ;;  %v603_v41 = vrot.slane %v588_v29, %v1620_v8 }
 0x101   : > { %v618_v46 = vcombine.low %v596_v40, %v610_v39  ;;  %v619_v47 = vcombine.high %v596_v40, %v610_v39  ;;  %v620_v48 = vcombine.low %v603_v41, %v617_v33  ;;  %v621_v49 = vcombine.high %v603_v41, %v617_v33 }
 0x103   : > { %v1649_v55 = vrot.slane %v618_v46, %v1620_v8  ;;  %v1652_v56 = vrot.slane %v620_v48, %v1620_v8  ;;  %v1655_v57 = vrot.slane %v619_v47, %v1620_v8  ;;  %v1658_v58 = vrot.slane %v621_v49, %v1620_v8 }
 0x104   : > { %v794_v48 = vcombine.high %v1644_v53, %v1644_v53  ;;  %v1713_v49 = vrot.slane %v1644_v53, %v1620_v8  ;;  %v769_v53 = vcombine.high %v1700_v24, %v1700_v24 }
 0x105   : > { %v1663_v63 = vcombine.high %v1649_v55, %v1649_v55  ;;  %v1667_v0 = vcombine.high %v1652_v56, %v1652_v56  ;;  %v1671_v1 = vcombine.high %v1655_v57, %v1655_v57  ;;  %v1675_v2 = vcombine.high %v1658_v58, %v1658_v58 }
 0x106   : > { %v836_v3 = vadd.f32 %v1649_v55, %v1646_v54  ;;  %v837_v4 = vadd.f32 %v1655_v57, %v1646_v54  ;;  %v840_v5 = vadd.f32 %v1652_v56, %v1646_v54  ;;  %v841_v6 = vadd.f32 %v1658_v58, %v1646_v54 }
 0x107   : > { %v838_v7 = vadd.f32 %v1663_v63, %v1646_v54  ;;  %v839_v9 = vadd.f32 %v1671_v1, %v1646_v54  ;;  %v842_v10 = vadd.f32 %v1667_v0, %v1646_v54  ;;  %v843_v11 = vadd.f32 %v1675_v2, %v1646_v54 }
 0x108   : > { %v844_v13 = vadd.f32 %v836_v3, %v686_v34  ;;  %v845_v14 = vadd.f32 %v837_v4, %v700_v43  ;;  %v848_v15 = vadd.f32 %v840_v5, %v693_v42  ;;  %v849_v19 = vadd.f32 %v841_v6, %v707_v44 }
 0x109   : > { %v846_v17 = vadd.f32 %v838_v7, %v708_v50  ;;  %v847_v18 = vadd.f32 %v839_v9, %v710_v60  ;;  %v850_v28 = vadd.f32 %v842_v10, %v709_v59  ;;  %v851_v31 = vadd.f32 %v843_v11, %v711_v61 }
 0x10a   : > { %v1227_v29 = vmul.f32 -1.442695, %v844_v13  ;;  %v1228_v30 = vmul.f32 -1.442695, %v845_v14  ;;  %v793_v34 = vrot.slane %v779_v45, %v1620_v8  ;;  %v1231_v37 = vmul.f32 -1.442695, %v848_v15 }
 0x10b   : > { %v1229_v33 = vmul.f32 -1.442695, %v846_v17  ;;  %v1230_v35 = vmul.f32 -1.442695, %v847_v18  ;;  %v903_v38 = vrot.slane %v1649_v55, 1  ;;  %v904_v40 = vrot.slane %v1655_v57, 1 }
 0x10c   : > { %1338 = vpow2.f32 %v1227_v29  ;;  %v1232_v39 = vmul.f32 -1.442695, %v849_v19  ;;  %v905_v41 = vrot.slane %v1663_v63, 1  ;;  %v766_v42 = vcombine.high %v744_v62, %v744_v62 }
 0x10d   : > { %1340 = vpow2.f32 %v1228_v30  ;;  %v767_v43 = vcombine.high %v1694_v12, %v1694_v12  ;;  %v1233_v44 = vmul.f32 -1.442695, %v850_v28  ;;  %v1234_v46 = vmul.f32 -1.442695, %v851_v31 }
 0x10e   : > { %1342 = vpow2.f32 %v1229_v33  ;;  %v919_v47 = vadd.f32 %v903_v38, %v901_v36  ;;  %v920_v45 = vadd.f32 %v904_v40, %v901_v36  ;;  %v921_v50 = vadd.f32 %v905_v41, %v901_v36 }
 0x10f   : > { %1344 = vpow2.f32 %v1230_v35  ;;  %v795_v51 = vcombine.high %v793_v34, %v793_v34  ;;  %v906_v52 = vrot.slane %v1671_v1, 1  ;;  %v907_v59 = vrot.slane %v1652_v56, 1 }
 0x110   : > { %1346 = vpow2.f32 %v1231_v37  ;;  %v927_v60 = vadd.f32 %v919_v47, %v744_v62  ;;  %v928_v61 = vadd.f32 %v920_v45, %v1697_v16  ;;  %v929_v3 = vadd.f32 %v921_v50, %v766_v42 }
 0x111   : > { %1348 = vpow2.f32 %v1232_v39  ;;  %v768_v4 = vcombine.high %v1697_v16, %v1697_v16  ;;  %v908_v5 = vrot.slane %v1658_v58, 1  ;;  %v816_v6 = vrot.slane %v794_v48, %v1620_v8 }
 0x112   : > { %1350 = vpow2.f32 %v1233_v44  ;;  %v909_v7 = vrot.slane %v1667_v0, 1  ;;  %v1235_v9 = vmul.f32 -1.442695, %v927_v60  ;;  %v1236_v10 = vmul.f32 -1.442695, %v928_v61 }
 0x113   : > { %1352 = vpow2.f32 %v1234_v46  ;;  %v1726_v62 = vrot.slane %v793_v34, %v1620_v8  ;;  %v910_v11 = vrot.slane %v1675_v2, 1  ;;  %v922_v13 = vadd.f32 %v906_v52, %v901_v36 }
 0x114   : > { %v1237_v14 = vmul.f32 -1.442695, %v929_v3  ;;  %v1730_v16 = vrot.slane %v795_v51, %v1620_v8  ;;  %v824_v17 = vcombine.high %v1713_v49, %v1713_v49  ;;  %v923_v18 = vadd.f32 %v907_v59, %v901_v36 }
 0x115   : > { %1354 = vpow2.f32 %v1235_v9  ;;  %v924_v29 = vadd.f32 %v908_v5, %v901_v36  ;;  %v1735_v30 = vrot.slane %v1646_v54, 3  ;;  %v826_v33 = vcombine.high %v816_v6, %v816_v6 }
 0x116   : > { %v1339_v15 = vpop.eup %1338  ;;  %1356 = vpow2.f32 %v1236_v10  ;;  %v925_v34 = vadd.f32 %v909_v7, %v901_v36  ;;  %v926_v38 = vadd.f32 %v910_v11, %v901_v36  ;;  %v930_v39 = vadd.f32 %v922_v13, %v768_v4 }
 0x117   : > { %v1341_v19 = vpop.eup %1340  ;;  %v876_v28 = vadd.f32 1.0, %v1339_v15  ;;  %1358 = vpow2.f32 %v1237_v14  ;;  %v931_v42 = vadd.f32 %v923_v18, %v1694_v12  ;;  %v1739_v44 = vrot.slane %v1646_v54, 2 }
 0x118   : > { %v1343_v31 = vpop.eup %1342  ;;  %v877_v35 = vadd.f32 1.0, %v1341_v19  ;;  %v932_v45 = vadd.f32 %v924_v29, %v1700_v24  ;;  %v985_v48 = vadd.f32 %v1735_v30, %v1713_v49  ;;  %v933_v36 = vadd.f32 %v925_v34, %v767_v43 }
 0x119   : > { %v1345_v37 = vpop.eup %1344  ;;  %v878_v8 = vadd.f32 1.0, %v1343_v31  ;;  %1360 = vrcp.f32 %v876_v28  ;;  %v986_v52 = vadd.f32 %v1735_v30, %v816_v6  ;;  %v934_v60 = vadd.f32 %v926_v38, %v769_v53 }
 0x11a   : > { %v1347_v40 = vpop.eup %1346  ;;  %v879_v41 = vadd.f32 1.0, %v1345_v37  ;;  %1362 = vrcp.f32 %v877_v35  ;;  %v1238_v61 = vmul.f32 -1.442695, %v930_v39  ;;  %v1239_v24 = vmul.f32 -1.442695, %v931_v42 }
 0x11b   : > { %v1349_v46 = vpop.eup %1348  ;;  %v880_v47 = vadd.f32 1.0, %v1347_v40  ;;  %1364 = vrcp.f32 %v878_v8  ;;  %v995_v4 = vrot.slane %v1649_v55, 2  ;;  %v1240_v49 = vmul.f32 -1.442695, %v932_v45 }
 0x11c   : > { %v1351_v50 = vpop.eup %1350  ;;  %v881_v51 = vadd.f32 1.0, %v1349_v46  ;;  %1366 = vrcp.f32 %v879_v41  ;;  %v987_v5 = vadd.f32 %v1735_v30, %v824_v17  ;;  %v996_v7 = vrot.slane %v1655_v57, 2 }
 0x11d   : > { %v1353_v59 = vpop.eup %1352  ;;  %v882_v54 = vadd.f32 1.0, %v1351_v50  ;;  %1368 = vrcp.f32 %v880_v47  ;;  %v1241_v43 = vmul.f32 -1.442695, %v933_v36  ;;  %v988_v6 = vadd.f32 %v1735_v30, %v826_v33 }
 0x11e   : > { %v883_v3 = vadd.f32 1.0, %v1353_v59  ;;  %1370 = vrcp.f32 %v881_v51  ;;  %v997_v9 = vrot.slane %v1663_v63, 2  ;;  %v1242_v10 = vmul.f32 -1.442695, %v934_v60 }
 0x11f   : > { %1372 = vrcp.f32 %v882_v54  ;;  %v1355_v12 = vpop.eup %1354  ;;  %v989_v11 = vadd.f32 %v1735_v30, %v1726_v62  ;;  %v998_v55 = vrot.slane %v1671_v1, 2  ;;  %v999_v57 = vrot.slane %v1652_v56, 2 }
 0x120   : > { %1374 = vrcp.f32 %v883_v3  ;;  %v1357_v53 = vpop.eup %1356  ;;  %v959_v14 = vadd.f32 1.0, %v1355_v12  ;;  %v1011_v15 = vadd.f32 %v995_v4, %v1739_v44  ;;  %v1000_v63 = vrot.slane %v1658_v58, 2 }
 0x121   : > { %1376 = vpow2.f32 %v1238_v61  ;;  %v1359_v13 = vpop.eup %1358  ;;  %v960_v18 = vadd.f32 1.0, %v1357_v53  ;;  %v1012_v19 = vadd.f32 %v996_v7, %v1739_v44  ;;  %v1013_v31 = vadd.f32 %v997_v9, %v1739_v44 }
 0x122   : > { %1378 = vpow2.f32 %v1239_v24  ;;  %v961_v29 = vadd.f32 1.0, %v1359_v13  ;;  %v1001_v35 = vrot.slane %v1667_v0, 2  ;;  %v1014_v56 = vadd.f32 %v998_v55, %v1739_v44 }
 0x123   : > { %v1361_v17 = vpop.eup %1360  ;;  %1380 = vpow2.f32 %v1240_v49  ;;  %v1015_v8 = vadd.f32 %v999_v57, %v1739_v44  ;;  %v1002_v40 = vrot.slane %v1675_v2, 2  ;;  %v825_v47 = vcombine.high %v1726_v62, %v1726_v62 }
 0x124   : > { %v1363_v28 = vpop.eup %1362  ;;  %1382 = vpow2.f32 %v1241_v43  ;;  %v1019_v1 = vmul.f32 %v1361_v17, %v1011_v15  ;;  %v827_v51 = vcombine.high %v1730_v16, %v1730_v16  ;;  %v1016_v36 = vadd.f32 %v1000_v63, %v1739_v44 }
 0x125   : > { %v1365_v33 = vpop.eup %1364  ;;  %1384 = vpow2.f32 %v1242_v10  ;;  %v1020_v34 = vmul.f32 %v1363_v28, %v1012_v19  ;;  %v1017_v2 = vadd.f32 %v1001_v35, %v1739_v44  ;;  %v990_v62 = vadd.f32 %v1735_v30, %v1730_v16 }
 0x126   : > { %v1367_v37 = vpop.eup %1366  ;;  %1386 = vrcp.f32 %v959_v14  ;;  %v1021_v58 = vmul.f32 %v1365_v33, %v1013_v31  ;;  %v1027_v38 = vadd.f32 %v1019_v1, %v985_v48  ;;  %v1018_v60 = vadd.f32 %v1002_v40, %v1739_v44 }
 0x127   : > { %v1369_v39 = vpop.eup %1368  ;;  %1388 = vrcp.f32 %v960_v18  ;;  %v1022_v41 = vmul.f32 %v1367_v37, %v1014_v56  ;;  %v1028_v42 = vadd.f32 %v1020_v34, %v986_v52  ;;  %v991_v4 = vadd.f32 %v1735_v30, %v825_v47 }
 0x128   : > { %v1371_v46 = vpop.eup %1370  ;;  %1390 = vrcp.f32 %v961_v29  ;;  %v1023_v0 = vmul.f32 %v1369_v39, %v1015_v8  ;;  %v1029_v45 = vadd.f32 %v1021_v58, %v987_v5  ;;  %v992_v12 = vadd.f32 %v1735_v30, %v827_v51 }
 0x129   : > { %v1373_v50 = vpop.eup %1372  ;;  %v1030_v48 = vadd.f32 %v1022_v41, %v988_v6  ;;  %1392 = vtanh.f32 %v1027_v38  ;;  %v1024_v61 = vmul.f32 %v1371_v46, %v1016_v36 }
 0x12a   : > { %v1375_v59 = vpop.eup %1374  ;;  %v1031_v54 = vadd.f32 %v1023_v0, %v989_v11  ;;  %1394 = vtanh.f32 %v1028_v42  ;;  %v1025_v49 = vmul.f32 %v1373_v50, %v1017_v2 }
 0x12b   : > { %v1377_v52 = vpop.eup %1376  ;;  %1396 = vtanh.f32 %v1029_v45  ;;  %v1026_v43 = vmul.f32 %v1375_v59, %v1018_v60  ;;  %v1032_v44 = vadd.f32 %v1024_v61, %v990_v62 }
 0x12c   : > { %v1379_v3 = vpop.eup %1378  ;;  %v962_v24 = vadd.f32 1.0, %v1377_v52  ;;  %1398 = vtanh.f32 %v1030_v48  ;;  %v1033_v55 = vadd.f32 %v1025_v49, %v991_v4 }
 0x12d   : > { %v1381_v5 = vpop.eup %1380  ;;  %v963_v7 = vadd.f32 1.0, %v1379_v3  ;;  %1400 = vtanh.f32 %v1031_v54  ;;  %v1034_v14 = vadd.f32 %v1026_v43, %v992_v12 }
 0x12e   : > { %v1383_v6 = vpop.eup %1382  ;;  %v964_v9 = vadd.f32 1.0, %v1381_v5  ;;  %1402 = vrcp.f32 %v962_v24 }
 0x12f   : > { %v1385_v16 = vpop.eup %1384  ;;  %v965_v53 = vadd.f32 1.0, %v1383_v6  ;;  %1404 = vrcp.f32 %v963_v7 }
 0x130   : > { %v1387_v10 = vpop.eup %1386  ;;  %v966_v11 = vadd.f32 1.0, %v1385_v16  ;;  %1406 = vrcp.f32 %v964_v9 }
 0x131   : > { %v1389_v13 = vpop.eup %1388  ;;  %1408 = vrcp.f32 %v965_v53  ;;  %v1051_v30 = vsub.f32 1.0, %v1387_v10  ;;  %v1043_v63 = vmul.f32 %v1387_v10, %v1561_v20 }
 0x132   : > { %v1391_v57 = vpop.eup %1390  ;;  %1410 = vrcp.f32 %v966_v11  ;;  %v1052_v17 = vsub.f32 1.0, %v1389_v13  ;;  %v1044_v31 = vmul.f32 %v1389_v13, %v1563_v21 }
 0x133   : > { %v1393_v15 = vpop.eup %1392  ;;  %1412 = vtanh.f32 %v1032_v44  ;;  %v1053_v19 = vsub.f32 1.0, %v1391_v57  ;;  %v1045_v35 = vmul.f32 %v1391_v57, %v1565_v22 }
 0x134   : > { %v1395_v18 = vpop.eup %1394  ;;  %1414 = vtanh.f32 %v1033_v55  ;;  %v1059_v28 = vmul.f32 %v1393_v15, %v1051_v30 }
 0x135   : > { %v1397_v29 = vpop.eup %1396  ;;  %1416 = vtanh.f32 %v1034_v14  ;;  %v1060_v1 = vmul.f32 %v1395_v18, %v1052_v17 }
 0x136   : > { %v1399_v33 = vpop.eup %1398  ;;  %v1061_v20 = vmul.f32 %v1397_v29, %v1053_v19  ;;  %v1067_v56 = vadd.f32 %v1059_v28, %v1043_v63 }
 0x137   : > { %v1401_v34 = vpop.eup %1400  ;;  %v1068_v37 = vadd.f32 %v1060_v1, %v1044_v31 }
 0x138   : > { %v1403_v8 = vpop.eup %1402  ;;  %v1069_v58 = vadd.f32 %v1061_v20, %v1045_v35  ;;  %1075 = vst [vmem:[%s1782_s12] sm:$0x1] %v1067_v56 }
 0x139   : > { %v1405_v38 = vpop.eup %1404  ;;  %v1054_v39 = vsub.f32 1.0, %v1403_v8  ;;  %1076 = vst [vmem:[%s1782_s12 + $0x1] sm:$0x1] %v1068_v37  ;;  %v1046_v21 = vmul.f32 %v1403_v8, %v1567_v23 }
 0x13a   : > { %v1407_v40 = vpop.eup %1406  ;;  %v1055_v41 = vsub.f32 1.0, %v1405_v38  ;;  %1077 = vst [vmem:[%s1782_s12 + $0x2] sm:$0x1] %v1069_v58  ;;  %v1047_v22 = vmul.f32 %v1405_v38, %v1572_v25 }
 0x13b   : > { %v1409_v42 = vpop.eup %1408  ;;  %v1062_v46 = vmul.f32 %v1399_v33, %v1054_v39  ;;  %v1056_v0 = vsub.f32 1.0, %v1407_v40  ;;  %v1048_v59 = vmul.f32 %v1407_v40, %v1574_v26 }
 0x13c   : > { %v1411_v47 = vpop.eup %1410  ;;  %v1063_v45 = vmul.f32 %v1401_v34, %v1055_v41  ;;  %v1057_v51 = vsub.f32 1.0, %v1409_v42  ;;  %v1049_v62 = vmul.f32 %v1409_v42, %v1576_v27 }
 0x13d   : > { %v1413_v50 = vpop.eup %1412  ;;  %v1070_v36 = vadd.f32 %v1062_v46, %v1046_v21  ;;  %v1058_v2 = vsub.f32 1.0, %v1411_v47  ;;  %v1050_v25 = vmul.f32 %v1411_v47, %v1587_v32 }
 0x13e   : > { %v1415_v48 = vpop.eup %1414  ;;  %v1064_v54 = vmul.f32 %v1413_v50, %v1056_v0  ;;  %v1071_v23 = vadd.f32 %v1063_v45, %v1047_v22 }
 0x13f   : > { %v1417_v52 = vpop.eup %1416  ;;  %v1065_v60 = vmul.f32 %v1415_v48, %v1057_v51  ;;  %1078 = vst [vmem:[%s1782_s12 + $0x3] sm:$0x1] %v1070_v36 }
 0x140   : > { %v1066_v61 = vmul.f32 %v1417_v52, %v1058_v2  ;;  %v1072_v3 = vadd.f32 %v1064_v54, %v1048_v59  ;;  %1079 = vst [vmem:[%s1782_s12 + $0x4] sm:$0x1] %v1071_v23 }
 0x141   : > { %v1073_v24 = vadd.f32 %v1065_v60, %v1049_v62 }
 0x142   : > { %v1074_v4 = vadd.f32 %v1066_v61, %v1050_v25  ;;  %1080 = vst [vmem:[%s1782_s12 + $0x5] sm:$0x1] %v1072_v3 }
 0x143   : > { %1081 = vst [vmem:[%s1782_s12 + $0x6] sm:$0x1] %v1073_v24 }
 0x144   : > { %1082 = vst [vmem:[%s1782_s12 + $0x7] sm:$0x1] %v1074_v4 }
 0x145 PF: > { %s14_s17 = sadd.s32 1, %s1440_s17   ;;  %s1813_s15 = smov %s1436_s16 }
 0x146   : > { %p11_p5 = scmp.ge.s32.totalorder %s14_s17, 4   ;;  %s1814_s16 = smov %s1816_s18 }
 0x148   :  { %13 = sbr.rel (!%p11_p5) target bundleno = 2 (0x2), region = 72 }

</bundles_post_ra>
